<compile_context>
chip_gen: v7x
topology: tpu7x:2x2x1
jax: 0.10.0
libtpu: 0.0.40
codegen_flags: <defaults>
</compile_context>

<pallas_src>
import jax
import jax.numpy as jnp
from jax import lax
from jax.experimental import pallas as pl
from jax.experimental.pallas import tpu as pltpu


def attention_kernel(x_ref, w_ref, out_ref):
    # x_ref: (Bt, S, D) batch block; w_ref: (D, 1); out_ref: (Bt, D)
    x = x_ref[...]                                  # (Bt, S, D) f32
    w = w_ref[...]                                  # (D, 1)     f32

    # attn_score = x @ attention -> (Bt, S, 1). Single MXU matmul over the
    # block; HIGHEST keeps full f32 accuracy (needed for the 1e-4 check).
    score = lax.dot_general(
        x, w,
        dimension_numbers=(((2,), (0,)), ((), ())),
        preferred_element_type=jnp.float32,
        precision=lax.Precision.HIGHEST,
    )                                               # (Bt, S, 1)

    # Numerically-stable softmax over the sequence axis; normalization deferred.
    # NOTE: score/e are lane-sparse (last dim 1); review item for v7x says only
    # restructure this if a bundle dump shows the EUP exp binding.
    m = jnp.max(score, axis=1, keepdims=True)       # (Bt, 1, 1)
    e = jnp.exp(score - m)                          # (Bt, S, 1) unnormalized weights
    denom = jnp.sum(e, axis=1, keepdims=True)       # (Bt, 1, 1)

    # Unnormalized weighted sum over S on the MXU: per row (1,S) @ (S,D) -> (1,D),
    # batched over Bt. Avoids materializing an (S, D) f32 elementwise temp.
    acc = lax.dot_general(
        e, x,
        dimension_numbers=(((1,), (1,)), ((0,), (0,))),
        preferred_element_type=jnp.float32,
        precision=lax.Precision.HIGHEST,
    )                                               # (Bt, 1, D)

    # Deferred normalization with an exact divide (approx reciprocal was one of
    # the sources of the previous mismatch).
    out_ref[...] = (acc[:, 0, :] / denom[:, 0, :]).astype(out_ref.dtype)


def _tpu_vmem_capacity_bytes():
    """Trace-time VMEM capacity; conservative (v7x per-TC) fallback."""
    try:
        cap = getattr(pltpu.get_tpu_info(), "vmem_capacity_bytes", None)
        if cap:
            return int(cap)
    except Exception:
        pass
    return 64 << 20


def _choose_block_rows(batch, seq, feat, itemsize, vmem_capacity):
    """Rows per grid step.

    v5e/v6e (128 MiB VMEM, single TC): biggest block that fits a ~20 MiB
    per-buffer budget -> fewest grid steps.
    v7x-like (64 MiB per-TC VMEM, 2 TCs): ~8 MiB per-buffer budget and, when
    the whole batch would fit in one block, force >= 4 grid steps so each
    TensorCore gets >= 2 "parallel" steps and keeps DMA/compute overlapped.
    """
    small_vmem = vmem_capacity < (100 << 20)          # proxy for v7x (dual TC)
    x_buffer_budget = (8 << 20) if small_vmem else (20 << 20)

    bytes_per_row = max(1, seq * feat * itemsize)
    rows = max(1, x_buffer_budget // bytes_per_row)

    if batch <= 8:
        # Tiny batch: single block equal to the full batch dim (keeps the
        # output block's sublane dim == full array dim).
        return batch
    if rows >= batch:
        if small_vmem and batch >= 32:
            quarter = -(-batch // 4)
            return max(8, ((quarter + 7) // 8) * 8)   # >= 4 steps, sublane aligned
        return batch
    # Partial batch per step: keep the output block sublane-aligned (mult of 8).
    return max(8, (rows // 8) * 8)


def attention_forward(x_in, attention_param, *, force_kernel=False, block_rows=None):
    """x_in: [B, S, D] float32, attention_param: [D, 1] float32 -> [B, D]."""
    B, S, D = x_in.shape

    # Size-based dispatch: below the kernel's useful regime, XLA fusion wins
    # (launch + per-step overhead and lane-sparse stores dominate for D < 128).
    use_kernel = force_kernel or (B * S * D >= (1 << 20) and D >= 128)
    if not use_kernel:
        return reference_forward(x_in, attention_param)

    vmem_capacity = _tpu_vmem_capacity_bytes()
    bt = block_rows if block_rows is not None else _choose_block_rows(
        B, S, D, x_in.dtype.itemsize, vmem_capacity)
    vmem_limit = min(int(vmem_capacity * 3 // 4), 128 << 20)  # 48 MiB v7x / 96 MiB v5e,v6e

    # No jnp.pad: Pallas handles the partial last block (OOB rows of the block
    # read stale data, but rows are independent and OOB writes are dropped).
    return pl.pallas_call(
        attention_kernel,
        out_shape=jax.ShapeDtypeStruct((B, D), x_in.dtype),
        grid=(pl.cdiv(B, bt),),
        in_specs=[
            pl.BlockSpec((bt, S, D), lambda b: (b, 0, 0)),   # Bt rows, full (S, D)
            pl.BlockSpec((D, 1), lambda b: (0, 0)),          # shared attention vector
        ],
        out_specs=pl.BlockSpec((bt, D), lambda b: (b, 0)),   # lane/sublane-dense slab
        compiler_params=pltpu.CompilerParams(
            dimension_semantics=("parallel",),
            vmem_limit_bytes=vmem_limit,
        ),
    )(x_in, attention_param)


def reference_forward(x_in, attention_param):
    # Pure-JAX reference matching the PyTorch module (B > 1, S > 1 path).
    # HIGHEST precision so the reference score matmul is full f32 like the kernel.
    attn_score = jnp.matmul(x_in, attention_param,
                            precision=lax.Precision.HIGHEST)[..., 0]      # [B, S]
    attn_distrib = jax.nn.softmax(attn_score, axis=-1)[..., None]         # [B, S, 1]
    return jnp.sum(x_in * attn_distrib, axis=-2)                          # [B, D]


def make_attention_param(key, attention_size):
    # torch.nn.init.xavier_normal_ on a (attention_size, 1) tensor:
    # std = gain * sqrt(2 / (fan_in + fan_out)) = sqrt(2 / (attention_size + 1))
    std = (2.0 / (attention_size + 1)) ** 0.5
    return std * jax.random.normal(key, (attention_size, 1), dtype=jnp.float32)


if __name__ == "__main__":
    key = jax.random.PRNGKey(0)
    k_x, k_w, k_x2 = jax.random.split(key, 3)

    # Small shape implied by the module: batch=2, seq_len=8, attention_size=32.
    B, S, D = 2, 8, 32
    x_in = jax.random.normal(k_x, (B, S, D), dtype=jnp.float32)
    attention_param = make_attention_param(k_w, D)

    out = attention_forward(x_in, attention_param, force_kernel=True)
    out = jax.block_until_ready(out)

    ref = reference_forward(x_in, attention_param)
    assert out.shape == (B, D)
    assert jnp.allclose(out, ref, atol=2e-4, rtol=2e-4), "mismatch vs reference"

    # Exercise the no-pad partial-last-block path (B not a multiple of the block).
    B2 = 20
    x2 = jax.random.normal(k_x2, (B2, S, D), dtype=jnp.float32)
    out2 = attention_forward(x2, attention_param, force_kernel=True, block_rows=8)
    out2 = jax.block_until_ready(out2)
    ref2 = reference_forward(x2, attention_param)
    assert out2.shape == (B2, D)
    assert jnp.allclose(out2, ref2, atol=2e-4, rtol=2e-4), "mismatch vs reference (tail block)"

    print("KERNEL_OK")
</pallas_src>

<mosaic_0001>
module attributes {stable_mosaic.version = 11 : i64} {
  func.func @attention_kernel(%arg0: i32, %arg1: memref<2x8x32xf32, #tpu.memory_space<vmem>>, %arg2: memref<32x1xf32, #tpu.memory_space<vmem>>, %arg3: memref<2x32xf32, #tpu.memory_space<vmem>>) attributes {dimension_semantics = [#tpu.dimension_semantics<parallel>], iteration_bounds = array<i64: 1>, scalar_prefetch = 0 : i64, scratch_operands = 0 : i64, tpu.core_type = #tpu.core_type<tc>, window_params = [{transform_indices = @transform_0, window_bounds = array<i64: 2, 8, 32>}, {pipeline_mode = #tpu.pipeline_mode<synchronous>, transform_indices = @transform_1, window_bounds = array<i64: 32, 1>}, {transform_indices = @transform_2, window_bounds = array<i64: 2, 32>}]} {
    %c0 = arith.constant 0 : index
    %c0_0 = arith.constant 0 : index
    %c0_1 = arith.constant 0 : index
    %0 = vector.load %arg1[%c0, %c0_0, %c0_1] : memref<2x8x32xf32, #tpu.memory_space<vmem>>, vector<2x8x32xf32>
    %c0_2 = arith.constant 0 : index
    %c0_3 = arith.constant 0 : index
    %1 = vector.load %arg2[%c0_2, %c0_3] : memref<32x1xf32, #tpu.memory_space<vmem>>, vector<32x1xf32>
    %cst = arith.constant dense<0.000000e+00> : vector<2x8x1xf32>
    %2 = tpu.matmul %0, %1, %cst {dimension_numbers = #tpu.dot_dimension_numbers<[2], [0], [0, 1], [1], [0, 0, 0, 1, 1, 1], [], []>, precision = #tpu.contract_precision<fp32>} : vector<2x8x32xf32>, vector<32x1xf32>, vector<2x8x1xf32> -> vector<2x8x1xf32>
    %cst_4 = arith.constant dense<0xFF800000> : vector<2x1xf32>
    %3 = vector.multi_reduction <maximumf>, %2, %cst_4 [1] : vector<2x8x1xf32> to vector<2x1xf32>
    %4 = vector.shape_cast %3 : vector<2x1xf32> to vector<2x1x1xf32>
    %5 = vector.broadcast %4 : vector<2x1x1xf32> to vector<2x8x1xf32>
    %6 = arith.subf %2, %5 : vector<2x8x1xf32>
    %7 = math.exp %6 : vector<2x8x1xf32>
    %cst_5 = arith.constant dense<0.000000e+00> : vector<2x1xf32>
    %8 = vector.multi_reduction <add>, %7, %cst_5 [1] : vector<2x8x1xf32> to vector<2x1xf32>
    %9 = vector.shape_cast %8 : vector<2x1xf32> to vector<2x1x1xf32>
    %cst_6 = arith.constant dense<0.000000e+00> : vector<2x1x32xf32>
    %10 = tpu.matmul %7, %0, %cst_6 {dimension_numbers = #tpu.dot_dimension_numbers<[1], [1], [2], [2], [0, 0, 0, 2, 1, 2], [0], [0]>, precision = #tpu.contract_precision<fp32>} : vector<2x8x1xf32>, vector<2x8x32xf32>, vector<2x1x32xf32> -> vector<2x1x32xf32>
    %11 = vector.shape_cast %10 : vector<2x1x32xf32> to vector<2x32xf32>
    %12 = vector.shape_cast %9 : vector<2x1x1xf32> to vector<2x1xf32>
    %13 = vector.broadcast %12 : vector<2x1xf32> to vector<2x32xf32>
    %14 = arith.divf %11, %13 : vector<2x32xf32>
    %c0_7 = arith.constant 0 : index
    %c0_8 = arith.constant 0 : index
    %15 = vector.load %arg3[%c0_7, %c0_8] : memref<2x32xf32, #tpu.memory_space<vmem>>, vector<2x32xf32>
    tpu.vector_store %arg3[%c0_7, %c0_8], %14 {strides = array<i32>} : memref<2x32xf32, #tpu.memory_space<vmem>>, vector<2x32xf32>,
    return
  }
  func.func @transform_0(%arg0: i32) -> (i32, i32, i32) {
    %c0_i32 = arith.constant 0 : i32
    %c0_i32_0 = arith.constant 0 : i32
    %c0_i32_1 = arith.constant 0 : i32
    return %arg0, %c0_i32, %c0_i32_0 : i32, i32, i32
  }
  func.func @transform_1(%arg0: i32) -> (i32, i32) {
    %c0_i32 = arith.constant 0 : i32
    %c0_i32_0 = arith.constant 0 : i32
    %c0_i32_1 = arith.constant 0 : i32
    return %c0_i32, %c0_i32_0 : i32, i32
  }
  func.func @transform_2(%arg0: i32) -> (i32, i32) {
    %c0_i32 = arith.constant 0 : i32
    %c0_i32_0 = arith.constant 0 : i32
    return %arg0, %c0_i32 : i32, i32
  }
}

</mosaic_0001>

<bundles_post_ra>
// kernel: tpu_custom_call.1
= control target key start
LH: loop header
LB: loop body
LE: loop exit
PB: predicated region body
PF: predicated region fallthrough
CT: control target
= control target key end

     0   :  { %vm18_vm0 = vcmask 261120   ;;  %s2018_s0 = inlined_call_operand.vmem [shape: f32[2,8,32], index: 0, kind: input, shape index: {}]   ;;  %s2019_s1 = inlined_call_operand.vmem [shape: f32[32,1], index: 1, kind: input, shape index: {}]   ;;  %s2020_s2 = inlined_call_operand.hbm [shape: f32[2,32], index: 2, kind: output, shape index: {}]  }
   0x1   :  { %v14_v0 = vld [vmem:[%s2019_s1] sm:$0xff]  ;;  %v15_v1 = vld [vmem:[%s2019_s1 + $0x8] sm:$0xff]  ;;  %v16_v2 = vld [vmem:[%s2019_s1 + $0x10] sm:$0xff] }
   0x2   :  { %v26_v3 = vand.u32 4294901760, %v14_v0  ;;  %v29_v4 = vand.u32 4294901760, %v15_v1  ;;  %v17_v5 = vld [vmem:[%s2019_s1 + $0x18] sm:$0xff]  ;;  %v32_v6 = vand.u32 4294901760, %v16_v2  ;;  %v1923_v7 = vld [vmem:[%s2018_s0] sm:$0xff]  ;;  %v1928_v8 = vld [vmem:[%s2018_s0 + $0x8] sm:$0xff] }
   0x3   :  { %v35_v9 = vand.u32 4294901760, %v17_v5  ;;  %v20_v10 = vsel %vm18_vm0, %v1923_v7, 0  ;;  %v23_v11 = vsel %vm18_vm0, %v1928_v8, 0 }
   0x4   :  { %7 = vsyncpa [#allocation3], 0  ;;  %v1932_v12 = vpack.c.bf16 %v29_v4, %v26_v3  ;;  %v1934_v13 = vand.u32 4294901760, %v20_v10  ;;  %v1936_v14 = vand.u32 4294901760, %v23_v11  ;;  %v116_v15 = vsub.f32 %v14_v0, %v26_v3  ;;  %s1892_s0 = smov [#allocation2]  }
   0x5   :  { %v1938_v16 = vpack.c.bf16 %v35_v9, %v32_v6  ;;  %v123_v17 = vsub.f32 %v15_v1, %v29_v4  ;;  %v130_v18 = vsub.f32 %v16_v2, %v32_v6  ;;  %v137_v19 = vsub.f32 %v17_v5, %v35_v9  ;;  %s1579_s1 = sshll.u32 %s1892_s0, 4  ;;  %s1580_s1 = int_to_ptr.vmem [resolvable:$true] %s1579_s1 }
   0x6   :  { %1774 = vmatprep.subr.bf16.mxu0 %v1932_v12  ;;  %v95_v20 = vsub.f32 %v20_v10, %v1934_v13  ;;  %v105_v21 = vsub.f32 %v23_v11, %v1936_v14  ;;  %v117_v22 = vand.u32 4294901760, %v116_v15  ;;  %v1889_v46 = vmov 0   ;;  %s1865_s21 = scalar_lea.vmem %s1580_s1, 32  ;;  %p1870_p1 = scmp.lt.s32.totalorder %s1580_s1, %s1580_s1 }
   0x7   :  { %1776 = vmatpush3.bf16.msra.mxu0 %v1932_v12  ;;  %v124_v23 = vand.u32 4294901760, %v123_v17  ;;  %v131_v24 = vand.u32 4294901760, %v130_v18  ;;  %v138_v25 = vand.u32 4294901760, %v137_v19  ;;  %v1789_v42 = vpack.c.bf16 %v123_v17, %v116_v15  ;;  %1855 = vset.pattern.permute.xlu1 %v1889_v46  ;;  %p1866_p0 = scmp.ne.s32.totalorder %s1580_s1, %s1865_s21  ;;  %p1871_p2 = scmp.lt.s32.totalorder %s1865_s21, %s1865_s21 }
   0x8   :  { %1778 = vmatprep.subr.bf16.mxu0 %v1938_v16  ;;  %v96_v26 = vand.u32 4294901760, %v95_v20  ;;  %v106_v27 = vand.u32 4294901760, %v105_v21  ;;  %v118_v28 = vsub.f32 %v116_v15, %v117_v22  ;;  %v1793_v43 = vpack.c.bf16 %v137_v19, %v130_v18 }
   0x9   :  { %v125_v29 = vsub.f32 %v123_v17, %v124_v23  ;;  %v132_v30 = vsub.f32 %v130_v18, %v131_v24  ;;  %v139_v31 = vsub.f32 %v137_v19, %v138_v25  ;;  %v1805_v44 = vpack.c.bf16 %v124_v23, %v117_v22  ;;  %p1872_p3 = por %p1871_p2, %p1870_p1 }
   0xa   :  { %v97_v32 = vsub.f32 %v95_v20, %v96_v26  ;;  %v107_v33 = vsub.f32 %v105_v21, %v106_v27  ;;  %v119_v34 = vand.u32 4294901760, %v118_v28  ;;  %v1809_v45 = vpack.c.bf16 %v138_v25, %v131_v24 }
   0xb   :  { %1780 = vmatpush3.bf16.msra.mxu0 %v1938_v16  ;;  %v126_v35 = vand.u32 4294901760, %v125_v29  ;;  %v133_v36 = vand.u32 4294901760, %v132_v30  ;;  %v140_v37 = vand.u32 4294901760, %v139_v31  ;;  %vm553_vm1 = vcmask 7168   ;;  %p1873_p4 = pnand %p1872_p3, %p1866_p0 }
   0xc   :  { %v98_v38 = vand.u32 4294901760, %v97_v32  ;;  %v108_v39 = vand.u32 4294901760, %v107_v33  ;;  %v1890_v18 = vmov 0.0   ;;  %vm1891_vm2 = vmmov 0  }
   0xd   :  { %v1781_v40 = vpack.c.bf16 %v126_v35, %v119_v34  ;;  %v1785_v41 = vpack.c.bf16 %v140_v37, %v133_v36  ;;  %1713 = vmatprep.subr.mxu1 %v1890_v18  ;;  %1715 = vmatprep.mubr.msk.f32.mxu1 %vm1891_vm2, %v1890_v18  ;;  %vm620_vm3 = vcmask 64512   ;;  %v1106_v35 = vand.u32 4294901760, %v1928_v8 }
   0xe   :  { %1655 = vmatprep.mubr.f32.mxu0 %v98_v38  ;;  %vm1568_vm4 = vcmask 1041409   ;;  %vm1571_vm5 = vcmask 254976  }
   0xf   :  { %1656 = vmatmul.mubr.f32.vlgmr.msra.gmra.mrb[0].mxu0 %v108_v39  ;;  %1782 = vmatprep.subr.bf16.mxu0 %v1781_v40  ;;  %v1183_v37 = vsub.f32 %v1928_v8, %v1106_v35 }
  0x10   :  { %1784 = vmatpush3.bf16.msra.mxu0 %v1781_v40  ;;  %1666 = vmatprep.mubr.f32.mxu0 %v1934_v13 }
  0x11   :  { %1786 = vmatprep.subr.bf16.mxu0 %v1785_v41  ;;  %v1184_v39 = vand.u32 4294901760, %v1183_v37 }
  0x14   :  { %1788 = vmatpush3.bf16.msra.mxu0 %v1785_v41  ;;  %v1185_v41 = vsub.f32 %v1183_v37, %v1184_v39 }
  0x15   :  { %1790 = vmatprep.subr.bf16.mxu0 %v1789_v42 }
  0x17   :  { %1667 = vmatmul.mubr.f32.vlgmr.msra.gmra.mrb[0].mxu0 %v1936_v14 }
  0x18   :  { %1792 = vmatpush3.bf16.msra.mxu0 %v1789_v42  ;;  %1677 = vmatprep.mubr.f32.mxu0 %v95_v20 }
  0x19   :  { %1794 = vmatprep.subr.bf16.mxu0 %v1793_v43 }
  0x1c   :  { %1796 = vmatpush3.bf16.msra.mxu0 %v1793_v43  ;;  %v1186_v43 = vand.u32 4294901760, %v1185_v41 }
  0x1d   :  { %1798 = vmatprep.subr.bf16.mxu0 %v1932_v12 }
  0x1f   :  { %1678 = vmatmul.mubr.f32.vlgmr.msra.gmra.mrb[0].mxu0 %v105_v21 }
  0x20   :  { %1800 = vmatpush3.bf16.msra.mxu0 %v1932_v12  ;;  %1688 = vmatprep.mubr.f32.mxu0 %v96_v26 }
  0x21   :  { %1802 = vmatprep.subr.bf16.mxu0 %v1938_v16 }
  0x24   :  { %1804 = vmatpush3.bf16.msra.mxu0 %v1938_v16 }
  0x25   :  { %1806 = vmatprep.subr.bf16.mxu0 %v1805_v44 }
  0x27   :  { %1689 = vmatmul.mubr.f32.vlgmr.msra.gmra.mrb[0].mxu0 %v106_v27 }
  0x28   :  { %1808 = vmatpush3.bf16.msra.mxu0 %v1805_v44  ;;  %1699 = vmatprep.mubr.f32.mxu0 %v1934_v13 }
  0x29   :  { %1810 = vmatprep.subr.bf16.mxu0 %v1809_v45 }
  0x2c   :  { %1812 = vmatpush3.bf16.msra.mxu0 %v1809_v45 }
  0x2d   :  { %1814 = vmatprep.subr.bf16.mxu0 %v1932_v12 }
  0x2f   :  { %1700 = vmatmul.mubr.f32.vlgmr.msra.gmra.mrb[0].mxu0 %v1936_v14 }
  0x30   :  { %1816 = vmatpush3.bf16.msra.mxu0 %v1932_v12  ;;  %1710 = vmatprep.mubr.f32.mxu0 %v1934_v13 }
  0x31   :  { %1818 = vmatprep.subr.bf16.mxu0 %v1938_v16 }
  0x34   :  { %1820 = vmatpush3.bf16.msra.mxu0 %v1938_v16  ;;  %v625_v16 = vand.u32 4294901760, %v1923_v7 }
  0x36   :  { %1714 = vmatpush3.msra.mxu1 %v625_v16  ;;  %v702_v23 = vsub.f32 %v1923_v7, %v625_v16 }
  0x37   :  { %1711 = vmatmul.mubr.f32.vlgmr.msra.gmra.mrb[0].mxu0 %v1936_v14  ;;  %1718 = vmatprep.subr.mxu1 %v1890_v18 }
  0x38   :  { %v703_v26 = vand.u32 4294901760, %v702_v23 }
  0x3a   :  { %v704_v29 = vsub.f32 %v702_v23, %v703_v26 }
  0x3c   :  { %v705_v32 = vand.u32 4294901760, %v704_v29 }
 0x10a   :  { %v1712_v47 = vpop.f32.mrb[0].mxu0 }
 0x10b   :  { %v561_v48 = vsel %vm553_vm1, %v1712_v47, -inf  ;;  %v543_v49 = vpop.f32.mrb[1].mxu0 }
 0x10c   :  { %v562_v50 = vrot.slane %v561_v48, 4  ;;  %v554_v51 = vsel %vm553_vm1, %v543_v49, -inf }
 0x10d   :  { %v555_v52 = vrot.slane %v554_v51, 4 }
 0x10e   :  { %v563_v53 = vmax.f32 %v561_v48, %v562_v50 }
 0x10f   :  { %v556_v54 = vmax.f32 %v554_v51, %v555_v52 }
 0x110   :  { %v564_v55 = vrot.slane %v563_v53, 2 }
 0x111   :  { %v557_v56 = vrot.slane %v556_v54, 2 }
 0x112   :  { %v565_v57 = vmax.f32 %v563_v53, %v564_v55 }
 0x113   :  { %v558_v58 = vmax.f32 %v556_v54, %v557_v56 }
 0x114   :  { %v566_v59 = vrot.slane %v565_v57, 1 }
 0x115   :  { %v559_v60 = vrot.slane %v558_v58, 1 }
 0x116   :  { %v567_v61 = vmax.f32 %v565_v57, %v566_v59 }
 0x117   :  { %v560_v62 = vmax.f32 %v558_v58, %v559_v60 }
 0x118   :  { %v569_v63 = vsub.f32 %v1712_v47, %v567_v61 }
 0x119   :  { %v568_v0 = vsub.f32 %v543_v49, %v560_v62 }
 0x11a   :  { %v572_v1 = vmul.f32 1.442695, %v569_v63 }
 0x11b   :  { %v570_v2 = vmul.f32 1.442695, %v568_v0 }
 0x11c   :  { %1857 = vpow2.f32 %v572_v1 }
 0x11d   :  { %1859 = vpow2.f32 %v570_v2 }
 0x126   :  { %v1858_v3 = vpop.eup %1857 }
 0x127   :  { %v1860_v4 = vpop.eup %1859  ;;  %v581_v5 = vsel %vm553_vm1, %v1858_v3, 0.0 }
 0x128   :  { %588 = vxpose.xlu0.b32.start.end [1/1] (short) (narrow) %v1860_v4, 8  ;;  %v582_v6 = vrot.slane %v581_v5, 4  ;;  %v574_v9 = vsel %vm553_vm1, %v1860_v4, 0.0 }
 0x129   :  { %v575_v10 = vrot.slane %v574_v9, 4 }
 0x12a   :  { %v583_v11 = vadd.f32 %v582_v6, %v581_v5 }
 0x12b   :  { %v576_v12 = vadd.f32 %v575_v10, %v574_v9 }
 0x12c   :  { %1070 = vxpose.xlu0.b32.start.end [1/1] (short) (narrow) %v1858_v3, 8  ;;  %v584_v13 = vrot.slane %v583_v11, 2 }
 0x12d   :  { %v577_v14 = vrot.slane %v576_v12, 2 }
 0x12e   :  { %v585_v15 = vadd.f32 %v584_v13, %v583_v11 }
 0x12f   :  { %v578_v17 = vadd.f32 %v577_v14, %v576_v12 }
 0x130   :  { %v586_v19 = vrot.slane %v585_v15, 1 }
 0x131   :  { %v579_v21 = vrot.slane %v578_v17, 1 }
 0x132   :  { %v587_v20 = vadd.f32 %v586_v19, %v585_v15 }
 0x133   :  { %v580_v22 = vadd.f32 %v579_v21, %v578_v17 }
 0x134   :  { %1558 = vperm.xlu1 %1855, %v587_v20  }
 0x138   :  { %1553 = vperm.xlu1 %1855, %v580_v22  }
 0x155   :  { %1856 = vset.pattern.permute.xlu0 %v1889_v46 }
 0x1a8   :  { %v604_v24 = vpop.trf.xlu0 }
 0x1a9   :  { %v622_v25 = vsel %vm620_vm3, %v604_v24, 0 }
 0x1aa   :  { %v690_v27 = vand.u32 4294901760, %v622_v25 }
 0x1ac   :  { %v691_v28 = vsub.f32 %v622_v25, %v690_v27  ;;  %v1086_v7 = vpop.trf.xlu0 }
 0x1ad   :  { %v1103_v34 = vsel %vm620_vm3, %v1086_v7, 0 }
 0x1ae   :  { %v692_v30 = vand.u32 4294901760, %v691_v28  ;;  %v1171_v36 = vand.u32 4294901760, %v1103_v34 }
 0x1b0   :  { %v693_v31 = vsub.f32 %v691_v28, %v692_v30  ;;  %v1172_v38 = vsub.f32 %v1103_v34, %v1171_v36 }
 0x1b2   :  { %v694_v33 = vand.u32 4294901760, %v693_v31  ;;  %v1173_v40 = vand.u32 4294901760, %v1172_v38 }
 0x1b3   :  { %v1559_v46 = vpop.permute.xlu1 %1558 }
 0x1b4   :  { %1716 = vmatmul.mubr.f32.vlgmr.msra.gmra.mrb[0].mxu1 %v694_v33  ;;  %v1174_v42 = vsub.f32 %v1172_v38, %v1173_v40  ;;  %1861 = vrcp.f32 %v1559_v46 }
 0x1b5   :  { %1719 = vmatpush3.msra.mxu1 %v705_v32  ;;  %1720 = vmatprep.mubr.msk.f32.mxu1 %vm1891_vm2, %v1890_v18 }
 0x1b6   :  { %1723 = vmatprep.subr.mxu1 %v1890_v18  ;;  %v1175_v44 = vand.u32 4294901760, %v1174_v42 }
 0x1b7   :  { %v1554_v47 = vpop.permute.xlu1 %1553 }
 0x1b8   :  { %1863 = vrcp.f32 %v1554_v47 }
 0x1bc   :  { %1721 = vmatmul.mubr.f32.vlgmr.msra.gmra.mrb[0].mxu1 %v690_v27 }
 0x1bd   :  { %1724 = vmatpush3.msra.mxu1 %v702_v23  ;;  %1725 = vmatprep.mubr.msk.f32.mxu1 %vm1891_vm2, %v1890_v18 }
 0x1be   :  { %1728 = vmatprep.subr.mxu1 %v1890_v18  ;;  %v1862_v48 = vpop.eup %1861 }
 0x1c2   :  { %v1864_v52 = vpop.eup %1863 }
 0x1c4   :  { %1726 = vmatmul.mubr.f32.vlgmr.msra.gmra.mrb[0].mxu1 %v691_v28 }
 0x1c5   :  { %1729 = vmatpush3.msra.mxu1 %v625_v16  ;;  %1730 = vmatprep.mubr.msk.f32.mxu1 %vm1891_vm2, %v1890_v18 }
 0x1c6   :  { %1733 = vmatprep.subr.mxu1 %v1890_v18 }
 0x1cc   :  { %1731 = vmatmul.mubr.f32.vlgmr.msra.gmra.mrb[0].mxu1 %v692_v30 }
 0x1cd   :  { %1734 = vmatpush3.msra.mxu1 %v703_v26  ;;  %1735 = vmatprep.mubr.msk.f32.mxu1 %vm1891_vm2, %v1890_v18 }
 0x1ce   :  { %1738 = vmatprep.subr.mxu1 %v1890_v18 }
 0x1d4   :  { %1736 = vmatmul.mubr.f32.vlgmr.msra.gmra.mrb[0].mxu1 %v690_v27 }
 0x1d5   :  { %1739 = vmatpush3.msra.mxu1 %v625_v16  ;;  %1740 = vmatprep.mubr.msk.f32.mxu1 %vm1891_vm2, %v1890_v18 }
 0x1d6   :  { %1743 = vmatprep.subr.mxu1 %v1890_v18 }
 0x1dc   :  { %1741 = vmatmul.mubr.f32.vlgmr.msra.gmra.mrb[0].mxu1 %v690_v27 }
 0x1dd   :  { %1744 = vmatpush3.msra.mxu1 %v1106_v35  ;;  %1745 = vmatprep.mubr.msk.f32.mxu1 %vm1891_vm2, %v1890_v18 }
 0x1de   :  { %1748 = vmatprep.subr.mxu1 %v1890_v18 }
 0x1e0   :  { %1746 = vmatmul.mubr.f32.vlgmr.msra.gmra.mrb[2].mxu1 %v1175_v44 }
 0x1e1   :  { %1749 = vmatpush3.msra.mxu1 %v1186_v43  ;;  %1750 = vmatprep.mubr.msk.f32.mxu1 %vm1891_vm2, %v1890_v18 }
 0x1e2   :  { %1753 = vmatprep.subr.mxu1 %v1890_v18 }
 0x1e8   :  { %1751 = vmatmul.mubr.f32.vlgmr.msra.gmra.mrb[2].mxu1 %v1171_v36 }
 0x1e9   :  { %1754 = vmatpush3.msra.mxu1 %v1183_v37  ;;  %1755 = vmatprep.mubr.msk.f32.mxu1 %vm1891_vm2, %v1890_v18 }
 0x1ea   :  { %1758 = vmatprep.subr.mxu1 %v1890_v18 }
 0x1f0   :  { %1756 = vmatmul.mubr.f32.vlgmr.msra.gmra.mrb[2].mxu1 %v1172_v38 }
 0x1f1   :  { %1759 = vmatpush3.msra.mxu1 %v1106_v35  ;;  %1760 = vmatprep.mubr.msk.f32.mxu1 %vm1891_vm2, %v1890_v18 }
 0x1f2   :  { %1763 = vmatprep.subr.mxu1 %v1890_v18 }
 0x1f8   :  { %1761 = vmatmul.mubr.f32.vlgmr.msra.gmra.mrb[2].mxu1 %v1173_v40 }
 0x1f9   :  { %1764 = vmatpush3.msra.mxu1 %v1184_v39  ;;  %1765 = vmatprep.mubr.msk.f32.mxu1 %vm1891_vm2, %v1890_v18 }
 0x1fa   :  { %1768 = vmatprep.subr.mxu1 %v1890_v18 }
 0x200   :  { %1766 = vmatmul.mubr.f32.vlgmr.msra.gmra.mrb[2].mxu1 %v1171_v36 }
 0x201   :  { %1769 = vmatpush3.msra.mxu1 %v1106_v35  ;;  %1770 = vmatprep.mubr.msk.f32.mxu1 %vm1891_vm2, %v1890_v18 }
 0x208   :  { %1771 = vmatmul.mubr.f32.vlgmr.msra.gmra.mrb[2].mxu1 %v1171_v36 }
 0x2af   :  { %v1066_v8 = vpop.f32.mrb[0].mxu1 }
 0x2b0   :  { %v1742_v45 = vpop.f32.mrb[1].mxu1  ;;  %v1562_v53 = vmul.f32 %v1864_v52, %v1066_v8 }
 0x2db   :  { %v1547_v49 = vpop.f32.mrb[2].mxu1 }
 0x2dc   :  { %v1564_v50 = vmul.f32 %v1862_v48, %v1547_v49  ;;  %v1772_v51 = vpop.f32.mrb[3].mxu1 }
 0x2de   :  { %v1567_v54 = vrot.slane %v1564_v50, 7 }
 0x2e0   :  { %v1569_v55 = vsel %vm1568_vm4, %v1567_v54, %v1562_v53 }
 0x2e1   :  { %1572 = vst.msk [vmem:[#allocation2] sm:$0x3] %vm1571_vm5, %v1569_v55 }
 0x2e2   :  { %1876 = shalt.err (!%p1873_p4)
}
 0x2e3   :  { %s1877_s24 = scalar_lea.hbm %s2020_s2, 32 }
 0x2e4   :  { %p1878_p5 = scmp.ne.s32.totalorder %s2020_s2, %s1877_s24  ;;  %p1881_p6 = scmp.lt.u32.totalorder %s1877_s24, %s2020_s2 }
 0x2e6   :  { %p1883_p7 = pnand %p1881_p6, %p1878_p5 }
 0x2e8   :  { %1886 = shalt.err (!%p1883_p7)
}
 0x2e9   :  { %1582 = dma.vmem_to_hbm [thread:$0]  %s1580_s1, 32, %s2020_s2, [#allocation3]  }
 0x2ea   :  { %1887 = dma.done.wait [#allocation3], 32  }
 0x2eb   :  { %1888 = vsyncadd [#allocation3], 4294967264 }
 0x2ec   :  { %1586 = vsyncpa [#allocation3], 1 }

</bundles_post_ra>
